<compile_context>
chip_gen: v7x
topology: tpu7x:2x2x1
jax: 0.10.0
libtpu: 0.0.40
codegen_flags: <defaults>
</compile_context>

<pallas_src>
import jax
import jax.numpy as jnp
from jax.experimental import pallas as pl
from jax.experimental.pallas import tpu as pltpu


def _round_up(x, m):
    return ((x + m - 1) // m) * m


def net_kernel(x_ref, wc_ref, bc_ref, o_ref):
    # x_ref : (TB, HW, C)   lane-dense feature tile (f32 or bf16)
    # wc_ref: (C, NCp)      folded neck+head weight, already (in, out) layout
    # bc_ref: (1, NCp)      folded bias (f32)
    # o_ref : (TB, NCp)     f32 logits (padded classes)
    x = x_ref[...].astype(jnp.float32)            # upcast: mean stays in f32
    pooled = jnp.mean(x, axis=1)                  # (TB, C) global average pool
    pooled = pooled.astype(wc_ref.dtype)          # bf16 path feeds bf16 to MXU
    acc = jnp.dot(pooled, wc_ref[...],
                  preferred_element_type=jnp.float32)   # (TB, NCp), f32 accum
    o_ref[...] = (acc + bc_ref[...]).astype(o_ref.dtype)


def net_forward(x_nchw, wn, bn, wh, bh, *,
                compute_dtype=jnp.float32, max_batch_tile=128):
    """x_nchw: (B, C, H, W) backbone feature map.  Returns (B, num_classes)."""
    B, C, H, W = x_nchw.shape
    NC = wh.shape[0]
    HW = H * W

    # ---- one-time parameter prep in the XLA wrapper (outside the kernel) ----
    # Fold neck -> head (both pure Linear, no activation/BN/dropout between).
    wc = jnp.dot(wn.T, wh.T)                       # (C, NC), pre-transposed
    bc = jnp.dot(bn, wh.T) + bh                    # (NC,)

    # Lane-dense output: pad classes to a multiple of 128 (unmasked vst).
    NCp = _round_up(NC, 128)
    wc = jnp.pad(wc, ((0, 0), (0, NCp - NC)))
    bc = jnp.pad(bc, (0, NCp - NC)).reshape(1, NCp).astype(jnp.float32)

    # Lane-dense input: (B, HW, C) puts C on the lane axis, HW on sublanes.
    x_bhwc = jnp.transpose(x_nchw.reshape(B, C, HW), (0, 2, 1))

    # Batch tiling: at least 8 rows (sublane aligned), capped so an f32 tile
    # double-buffers comfortably in scoped VMEM (re-derive cap for v7x 64 MiB).
    TB = min(max_batch_tile, _round_up(B, 8))
    Bp = _round_up(B, TB)
    x_bhwc = jnp.pad(x_bhwc, ((0, Bp - B), (0, 0), (0, 0)))

    x_bhwc = x_bhwc.astype(compute_dtype)
    wc = wc.astype(compute_dtype)

    out = pl.pallas_call(
        net_kernel,
        out_shape=jax.ShapeDtypeStruct((Bp, NCp), jnp.float32),
        grid_spec=pltpu.PrefetchScalarGridSpec(
            num_scalar_prefetch=0,
            grid=(Bp // TB,),
            in_specs=[
                pl.BlockSpec((TB, HW, C), lambda b: (b, 0, 0)),   # batch tile
                pl.BlockSpec((C, NCp), lambda b: (0, 0)),         # folded W (resident)
                pl.BlockSpec((1, NCp), lambda b: (0, 0)),         # folded bias
            ],
            out_specs=pl.BlockSpec((TB, NCp), lambda b: (b, 0)),
        ),
        compiler_params=pltpu.CompilerParams(
            dimension_semantics=("parallel",),
            vmem_limit_bytes=64 * 1024 * 1024,
        ),
    )(x_bhwc, wc, bc)

    return out[:B, :NC]


def init_params(key, in_features, num_classes):
    """PyTorch nn.Linear default init: U(-1/sqrt(fan_in), +1/sqrt(fan_in))."""
    k_wn, k_bn, k_wh, k_bh = jax.random.split(key, 4)
    bound = 1.0 / jnp.sqrt(in_features)
    wn = jax.random.uniform(k_wn, (in_features, in_features), jnp.float32,
                            -bound, bound)
    bn = jax.random.uniform(k_bn, (in_features,), jnp.float32, -bound, bound)
    wh = jax.random.uniform(k_wh, (num_classes, in_features), jnp.float32,
                            -bound, bound)
    bh = jax.random.uniform(k_bh, (num_classes,), jnp.float32, -bound, bound)
    return wn, bn, wh, bh


if __name__ == "__main__":
    # Small shapes standing in for swin_tiny's (B, 768, 7, 7) pre-pool features.
    B, C, H, W = 2, 32, 7, 7
    NUM_CLASSES = 2

    key = jax.random.PRNGKey(0)
    k_x, k_p = jax.random.split(key)
    x = jax.random.normal(k_x, (B, C, H, W), jnp.float32)   # NCHW feature map
    wn, bn, wh, bh = init_params(k_p, C, NUM_CLASSES)

    # Pure-JAX reference (pool -> neck -> head), unfused, f32.
    pooled = x.reshape(B, C, H * W).mean(-1)
    ref = (pooled @ wn.T + bn) @ wh.T + bh

    # f32 path: strict check.
    out_f32 = jax.block_until_ready(net_forward(x, wn, bn, wh, bh))
    assert out_f32.shape == (B, NUM_CLASSES)
    assert jnp.allclose(out_f32, ref, atol=1e-4, rtol=1e-4)

    # bf16 compute path (halved DMA, native MXU dtype): loose check.
    out_bf16 = jax.block_until_ready(
        net_forward(x, wn, bn, wh, bh, compute_dtype=jnp.bfloat16))
    assert out_bf16.shape == (B, NUM_CLASSES)
    assert jnp.allclose(out_bf16, ref, atol=5e-2, rtol=5e-2)

    print("KERNEL_OK")
</pallas_src>

<mosaic_0001>
module attributes {stable_mosaic.version = 11 : i64} {
  func.func @net_kernel(%arg0: i32, %arg1: memref<8x49x32xf32, #tpu.memory_space<vmem>>, %arg2: memref<32x128xf32, #tpu.memory_space<vmem>>, %arg3: memref<1x128xf32, #tpu.memory_space<vmem>>, %arg4: memref<8x128xf32, #tpu.memory_space<vmem>>) attributes {dimension_semantics = [#tpu.dimension_semantics<parallel>], iteration_bounds = array<i64: 1>, scalar_prefetch = 0 : i64, scratch_operands = 0 : i64, tpu.core_type = #tpu.core_type<tc>, window_params = [{transform_indices = @transform_0, window_bounds = array<i64: 8, 49, 32>}, {pipeline_mode = #tpu.pipeline_mode<synchronous>, transform_indices = @transform_1, window_bounds = array<i64: 32, 128>}, {pipeline_mode = #tpu.pipeline_mode<synchronous>, transform_indices = @transform_2, window_bounds = array<i64: 1, 128>}, {transform_indices = @transform_3, window_bounds = array<i64: 8, 128>}]} {
    %c0 = arith.constant 0 : index
    %c0_0 = arith.constant 0 : index
    %c0_1 = arith.constant 0 : index
    %0 = vector.load %arg1[%c0, %c0_0, %c0_1] : memref<8x49x32xf32, #tpu.memory_space<vmem>>, vector<8x49x32xf32>
    %cst = arith.constant dense<0.000000e+00> : vector<8x32xf32>
    %1 = vector.multi_reduction <add>, %0, %cst [1] : vector<8x49x32xf32> to vector<8x32xf32>
    %cst_2 = arith.constant 4.900000e+01 : f32
    %2 = vector.broadcast %cst_2 : f32 to vector<8x32xf32>
    %3 = arith.divf %1, %2 : vector<8x32xf32>
    %c0_3 = arith.constant 0 : index
    %c0_4 = arith.constant 0 : index
    %4 = vector.load %arg2[%c0_3, %c0_4] : memref<32x128xf32, #tpu.memory_space<vmem>>, vector<32x128xf32>
    %cst_5 = arith.constant dense<0.000000e+00> : vector<8x128xf32>
    %5 = tpu.matmul %3, %4, %cst_5 {dimension_numbers = #tpu.dot_dimension_numbers<[1], [0], [0], [1], [0, 0, 1, 1], [], []>} : vector<8x32xf32>, vector<32x128xf32>, vector<8x128xf32> -> vector<8x128xf32>
    %c0_6 = arith.constant 0 : index
    %c0_7 = arith.constant 0 : index
    %6 = vector.load %arg3[%c0_6, %c0_7] : memref<1x128xf32, #tpu.memory_space<vmem>>, vector<1x128xf32>
    %7 = vector.broadcast %6 : vector<1x128xf32> to vector<8x128xf32>
    %8 = arith.addf %5, %7 : vector<8x128xf32>
    %c0_8 = arith.constant 0 : index
    %c0_9 = arith.constant 0 : index
    %9 = vector.load %arg4[%c0_8, %c0_9] : memref<8x128xf32, #tpu.memory_space<vmem>>, vector<8x128xf32>
    tpu.vector_store %arg4[%c0_8, %c0_9], %8 {strides = array<i32>} : memref<8x128xf32, #tpu.memory_space<vmem>>, vector<8x128xf32>,
    return
  }
  func.func @transform_0(%arg0: i32) -> (i32, i32, i32) {
    %c0_i32 = arith.constant 0 : i32
    %c0_i32_0 = arith.constant 0 : i32
    %c0_i32_1 = arith.constant 0 : i32
    return %arg0, %c0_i32, %c0_i32_0 : i32, i32, i32
  }
  func.func @transform_1(%arg0: i32) -> (i32, i32) {
    %c0_i32 = arith.constant 0 : i32
    %c0_i32_0 = arith.constant 0 : i32
    %c0_i32_1 = arith.constant 0 : i32
    return %c0_i32, %c0_i32_0 : i32, i32
  }
  func.func @transform_2(%arg0: i32) -> (i32, i32) {
    %c0_i32 = arith.constant 0 : i32
    %c0_i32_0 = arith.constant 0 : i32
    %c0_i32_1 = arith.constant 0 : i32
    return %c0_i32, %c0_i32_0 : i32, i32
  }
  func.func @transform_3(%arg0: i32) -> (i32, i32) {
    %c0_i32 = arith.constant 0 : i32
    %c0_i32_0 = arith.constant 0 : i32
    return %arg0, %c0_i32 : i32, i32
  }
}

</mosaic_0001>

<bundles_post_ra>
// kernel: tpu_custom_call.1
= control target key start
LH: loop header
LB: loop body
LE: loop exit
PB: predicated region body
PF: predicated region fallthrough
CT: control target
= control target key end

     0   :  { %8 = vsyncpa [#allocation3], 0  ;;  %s663_s0 = inlined_call_operand.hbm [shape: f32[8,49,32], index: 0, kind: input, shape index: {}]   ;;  %s664_s1 = inlined_call_operand.hbm [shape: f32[32,128], index: 1, kind: input, shape index: {}]   ;;  %s665_s2 = inlined_call_operand.hbm [shape: f32[1,128], index: 2, kind: input, shape index: {}]   ;;  %s666_s3 = inlined_call_operand.hbm [shape: f32[8,128], index: 3, kind: output, shape index: {}]  }
   0x1   :  { %9 = vsyncpa [#allocation6], 0 }
   0x2   :  { %10 = vsyncpa [#allocation4], 0  ;;  %s522_s12 = smov [#allocation5]   ;;  %s523_s14 = smov [#allocation2]  }
   0x3   :  { %s28_s13 = sshll.u32 %s522_s12, 4  ;;  %s16_s15 = sshll.u32 %s523_s14, 4  ;;  %s29_s13 = int_to_ptr.vmem [resolvable:$true] %s28_s13  ;;  %s551_s15 = int_to_ptr.vmem [resolvable:$true] %s16_s15 }
   0x4   :  { %s428_s18 = scalar_lea.hbm %s664_s1, 512 }
   0x5   :  { %p429_p0 = scmp.ne.s32.totalorder %s664_s1, %s428_s18  ;;  %p432_p1 = scmp.lt.u32.totalorder %s428_s18, %s664_s1 }
   0x7   :  { %p434_p2 = pnand %p432_p1, %p429_p0 }
   0x9   :  { %437 = shalt.err (!%p434_p2)
}
   0xa   :  { %s438_s23 = scalar_lea.vmem %s29_s13, 512  ;;  %p443_p4 = scmp.lt.s32.totalorder %s29_s13, %s29_s13 }
   0xb   :  { %p439_p3 = scmp.ne.s32.totalorder %s29_s13, %s438_s23  ;;  %p444_p5 = scmp.lt.s32.totalorder %s438_s23, %s438_s23 }
   0xd   :  { %p445_p6 = por %p444_p5, %p443_p4 }
   0xf   :  { %p446_p7 = pnand %p445_p6, %p439_p3 }
  0x11   :  { %449 = shalt.err (!%p446_p7)
}
  0x12   :  { %s524_s24 = smov 128   ;;  %s525_s25 = smov 8  }
  0x13   :  { %34 = dma.hbm_to_vmem [thread:$0]  %s664_s1, 512, %s29_s13, [#allocation6], %s524_s24, %s524_s24, %s525_s25  }
  0x14   :  { %s450_s30 = scalar_lea.hbm %s663_s0, 7168 }
  0x15   :  { %p451_p8 = scmp.ne.s32.totalorder %s663_s0, %s450_s30  ;;  %p454_p9 = scmp.lt.u32.totalorder %s450_s30, %s663_s0 }
  0x17   :  { %p456_p10 = pnand %p454_p9, %p451_p8 }
  0x19   :  { %459 = shalt.err (!%p456_p10)
}
  0x1a   :  { %s460_s8 = scalar_lea.vmem %s551_s15, 7168  ;;  %p465_p12 = scmp.lt.s32.totalorder %s551_s15, %s551_s15 }
  0x1b   :  { %p461_p11 = scmp.ne.s32.totalorder %s551_s15, %s460_s8  ;;  %p466_p13 = scmp.lt.s32.totalorder %s460_s8, %s460_s8 }
  0x1d   :  { %p467_p0 = por %p466_p13, %p465_p12 }
  0x1f   :  { %p468_p1 = pnand %p467_p0, %p461_p11 }
  0x21   :  { %471 = shalt.err (!%p468_p1)
}
  0x22   :  { %22 = dma.hbm_to_vmem [thread:$0]  %s663_s0, 7168, %s551_s15, [#allocation3], %s524_s24, %s524_s24, %s525_s25  }
  0x23   :  { %s526_s10 = smov [#allocation7]   ;;  %s472_s14 = scalar_lea.hbm %s665_s2, 16 }
  0x24   :  { %s41_s11 = sshll.u32 %s526_s10, 4  ;;  %p473_p2 = scmp.ne.s32.totalorder %s665_s2, %s472_s14  ;;  %s42_s11 = int_to_ptr.vmem [resolvable:$true] %s41_s11 }
  0x25   :  { %p476_p3 = scmp.lt.u32.totalorder %s472_s14, %s665_s2 }
  0x27   :  { %p478_p4 = pnand %p476_p3, %p473_p2 }
  0x29   :  { %481 = shalt.err (!%p478_p4)
}
  0x2a   :  { %s482_s20 = scalar_lea.vmem %s42_s11, 16  ;;  %s486_s0 = scalar_lea.vmem %s42_s11, 32 }
  0x2b   :  { %p483_p5 = scmp.ne.s32.totalorder %s42_s11, %s482_s20  ;;  %p487_p6 = scmp.lt.s32.totalorder %s42_s11, %s42_s11 }
  0x2c   :  { %p488_p7 = scmp.lt.s32.totalorder %s486_s0, %s482_s20 }
  0x2e   :  { %p489_p8 = por %p488_p7, %p487_p6 }
  0x30   :  { %p490_p9 = pnand %p489_p8, %p483_p5 }
  0x32   :  { %493 = shalt.err (!%p490_p9)
}
  0x33   :  { %44 = dma.hbm_to_vmem [thread:$0]  %s665_s2, 16, %s42_s11, [#allocation6]  }
  0x34   :  { %516 = dma.done.wait [#allocation3], 7168  }
  0x35   :  { %517 = vsyncadd [#allocation3], 4294960128 }
  0x36   :  { %518 = dma.done.wait [#allocation6], 528  }
  0x37   :  { %519 = vsyncadd [#allocation6], 4294966768  ;;  %v527_v0 = vmov 0.0|0.0   ;;  %vm528_vm0 = vmmov 0   ;;  %v529_v1 = vmov 0.0   ;;  %vm110_vm1 = vcmask 261120  }
  0x38   :  { %413 = vmatprep.subr.bf16.mxu0 %v527_v0  ;;  %410 = vmatprep.mubr.msk.f32.mxu0 %vm528_vm0, %v529_v1  ;;  %v273_v2 = vld [vmem:[#allocation5] sm:$0xff]  ;;  %v274_v3 = vld [vmem:[#allocation5 + $0x8] sm:$0xff]  ;;  %v275_v4 = vld [vmem:[#allocation5 + $0x10] sm:$0xff]  ;;  %vm122_vm2 = vcmask 253952   ;;  %vm292_vm3 = vcmask 1041409   ;;  %vm294_vm4 = vcmask 1042434  }
  0x39   :  { %v414_v5 = vpack.c.bf16 %v274_v3, %v273_v2  ;;  %v276_v6 = vld [vmem:[#allocation5 + $0x18] sm:$0xff]  ;;  %v54_v7 = vld [vmem:[#allocation2] sm:$0xff]  ;;  %v55_v8 = vld [vmem:[#allocation2 + $0x8] sm:$0xff]  ;;  %vm296_vm5 = vcmask 1043459   ;;  %vm298_vm6 = vcmask 1044484   ;;  %vm300_vm7 = vcmask 1045509  }
  0x3a   :  { %v56_v9 = vld [vmem:[#allocation2 + $0x10] sm:$0xff]  ;;  %v57_v10 = vld [vmem:[#allocation2 + $0x18] sm:$0xff]  ;;  %v111_v11 = vsel %vm110_vm1, %v54_v7, 0.0  ;;  %v112_v12 = vsel %vm110_vm1, %v55_v8, 0.0  ;;  %v417_v13 = vpack.c.bf16 %v276_v6, %v275_v4  ;;  %v58_v14 = vld [vmem:[#allocation2 + $0x20] sm:$0xff]  ;;  %vm302_vm8 = vcmask 1046534  }
  0x3b   :  { %415 = vmatpush3.bf16.msra.mxu0 %v414_v5  ;;  %v61_v15 = vld [vmem:[#allocation2 + $0x38] sm:$0xff]  ;;  %v113_v16 = vadd.f32 %v112_v12, %v111_v11  ;;  %v114_v17 = vsel %vm110_vm1, %v56_v9, 0.0  ;;  %v62_v18 = vld [vmem:[#allocation2 + $0x40] sm:$0xff]  ;;  %v63_v19 = vld [vmem:[#allocation2 + $0x48] sm:$0xff]  ;;  %v116_v21 = vsel %vm110_vm1, %v57_v10, 0.0  ;;  %v118_v31 = vsel %vm110_vm1, %v58_v14, 0.0 }
  0x3c   :  { %416 = vmatprep.subr.bf16.mxu0 %v527_v0  ;;  %v64_v20 = vld [vmem:[#allocation2 + $0x50] sm:$0xff]  ;;  %v59_v22 = vld [vmem:[#allocation2 + $0x28] sm:$0xff]  ;;  %v65_v24 = vld [vmem:[#allocation2 + $0x58] sm:$0xff]  ;;  %v131_v26 = vsel %vm110_vm1, %v61_v15, 0.0  ;;  %v132_v27 = vsel %vm110_vm1, %v62_v18, 0.0  ;;  %v134_v33 = vsel %vm110_vm1, %v63_v19, 0.0 }
  0x3d   :  { %v60_v23 = vld [vmem:[#allocation2 + $0x30] sm:$0x1]  ;;  %v115_v25 = vadd.f32 %v114_v17, %v113_v16  ;;  %v69_v29 = vld [vmem:[#allocation2 + $0x78] sm:$0xff]  ;;  %v70_v30 = vld [vmem:[#allocation2 + $0x80] sm:$0xff]  ;;  %v133_v32 = vadd.f32 %v132_v27, %v131_v26  ;;  %v136_v38 = vsel %vm110_vm1, %v64_v20, 0.0  ;;  %v120_v42 = vsel %vm110_vm1, %v59_v22, 0.0 }
  0x3e   :  { %v68_v28 = vld [vmem:[#allocation2 + $0x70] sm:$0xff]  ;;  %v66_v34 = vld [vmem:[#allocation2 + $0x60] sm:$0xff]  ;;  %v67_v35 = vld [vmem:[#allocation2 + $0x68] sm:$0x1]  ;;  %v151_v44 = vsel %vm110_vm1, %v69_v29, 0.0  ;;  %v153_v45 = vsel %vm110_vm1, %v70_v30, 0.0 }
  0x3f   :  { %418 = vmatpush3.bf16.msra.mxu0 %v417_v13  ;;  %v71_v36 = vld [vmem:[#allocation2 + $0x88] sm:$0xff]  ;;  %v117_v37 = vadd.f32 %v116_v21, %v115_v25  ;;  %v150_v39 = vsel %vm110_vm1, %v68_v28, 0.0  ;;  %v76_v41 = vld [vmem:[#allocation2 + $0xb0] sm:$0xff]  ;;  %v135_v43 = vadd.f32 %v134_v33, %v133_v32  ;;  %v77_v47 = vld [vmem:[#allocation2 + $0xb8] sm:$0xff]  ;;  %v123_v49 = vsel %vm122_vm2, %v60_v23, 0.0  ;;  %s530_s2 = smov [#allocation8]  }
  0x40   :  { %v75_v40 = vld [vmem:[#allocation2 + $0xa8] sm:$0xff]  ;;  %v72_v46 = vld [vmem:[#allocation2 + $0x90] sm:$0xff]  ;;  %v138_v50 = vsel %vm110_vm1, %v65_v24, 0.0  ;;  %v152_v51 = vadd.f32 %v151_v44, %v150_v39  ;;  %v73_v52 = vld [vmem:[#allocation2 + $0x98] sm:$0xff]  ;;  %v140_v55 = vsel %vm110_vm1, %v66_v34, 0.0  ;;  %v142_v56 = vsel %vm122_vm2, %v67_v35, 0.0 }
  0x41   :  { %v119_v48 = vadd.f32 %v118_v31, %v117_v37  ;;  %v78_v53 = vld [vmem:[#allocation2 + $0xc0] sm:$0xff]  ;;  %v137_v54 = vadd.f32 %v136_v38, %v135_v43  ;;  %v155_v57 = vsel %vm110_vm1, %v71_v36, 0.0  ;;  %v169_v62 = vsel %vm110_vm1, %v75_v40, 0.0  ;;  %v79_v0 = vld [vmem:[#allocation2 + $0xc8] sm:$0xff]  ;;  %v84_v6 = vld [vmem:[#allocation2 + $0xf0] sm:$0xff]  ;;  %s385_s22 = sshll.u32 %s530_s2, 4  ;;  %s386_s22 = int_to_ptr.vmem [resolvable:$true] %s385_s22 }
  0x42   :  { %v74_v58 = vld [vmem:[#allocation2 + $0xa0] sm:$0x1]  ;;  %v154_v61 = vadd.f32 %v153_v45, %v152_v51  ;;  %v170_v63 = vsel %vm110_vm1, %v76_v41, 0.0  ;;  %v83_v1 = vld [vmem:[#allocation2 + $0xe8] sm:$0xff]  ;;  %v157_v3 = vsel %vm110_vm1, %v72_v46, 0.0  ;;  %v172_v5 = vsel %vm110_vm1, %v77_v47, 0.0  ;;  %p499_p11 = scmp.lt.s32.totalorder %s386_s22, %s386_s22 }
  0x43   :  { %v82_v59 = vld [vmem:[#allocation2 + $0xe0] sm:$0xff]  ;;  %v121_v60 = vadd.f32 %v120_v42, %v119_v48  ;;  %v139_v2 = vadd.f32 %v138_v50, %v137_v54  ;;  %v171_v4 = vadd.f32 %v170_v63, %v169_v62  ;;  %v159_v9 = vsel %vm110_vm1, %v73_v52, 0.0  ;;  %v80_v11 = vld [vmem:[#allocation2 + $0xd0] sm:$0xff]  ;;  %v85_v12 = vld [vmem:[#allocation2 + $0xf8] sm:$0xff]  ;;  %s494_s23 = scalar_lea.vmem %s386_s22, 128 }
  0x44   :  { %v156_v8 = vadd.f32 %v155_v57, %v154_v61  ;;  %v174_v10 = vsel %vm110_vm1, %v78_v53, 0.0  ;;  %v161_v14 = vsel %vm122_vm2, %v74_v58, 0.0  ;;  %v188_v16 = vsel %vm110_vm1, %v82_v59, 0.0  ;;  %v81_v17 = vld [vmem:[#allocation2 + $0xd8] sm:$0x1]  ;;  %v86_v22 = vld [vmem:[#allocation2 + $0x100] sm:$0xff]  ;;  %p495_p10 = scmp.ne.s32.totalorder %s386_s22, %s494_s23  ;;  %p500_p12 = scmp.lt.s32.totalorder %s494_s23, %s494_s23 }
  0x45   :  { %v124_v7 = vadd.f32 %v123_v49, %v121_v60  ;;  %v141_v13 = vadd.f32 %v140_v55, %v139_v2  ;;  %v173_v15 = vadd.f32 %v172_v5, %v171_v4  ;;  %v176_v20 = vsel %vm110_vm1, %v79_v0, 0.0  ;;  %v87_v23 = vld [vmem:[#allocation2 + $0x108] sm:$0xff]  ;;  %v89_v28 = vld [vmem:[#allocation2 + $0x118] sm:$0xff]  ;;  %v90_v33 = vld [vmem:[#allocation2 + $0x120] sm:$0xff] }
  0x46   :  { %v158_v19 = vadd.f32 %v157_v3, %v156_v8  ;;  %v189_v21 = vsel %vm110_vm1, %v83_v1, 0.0  ;;  %v191_v27 = vsel %vm110_vm1, %v84_v6, 0.0  ;;  %v178_v31 = vsel %vm110_vm1, %v80_v11, 0.0  ;;  %v91_v34 = vld [vmem:[#allocation2 + $0x128] sm:$0xff]  ;;  %v88_v43 = vld [vmem:[#allocation2 + $0x110] sm:$0x1]  ;;  %p501_p13 = por %p500_p12, %p499_p11 }
  0x47   :  { %v125_v18 = vrot.slane %v124_v7, 4  ;;  %v143_v24 = vadd.f32 %v142_v56, %v141_v13  ;;  %v175_v25 = vadd.f32 %v174_v10, %v173_v15  ;;  %v190_v26 = vadd.f32 %v189_v21, %v188_v16  ;;  %v92_v44 = vld [vmem:[#allocation2 + $0x130] sm:$0xff]  ;;  %v93_v53 = vld [vmem:[#allocation2 + $0x138] sm:$0xff]  ;;  %v94_v61 = vld [vmem:[#allocation2 + $0x140] sm:$0xff] }
  0x48   :  { %v160_v30 = vadd.f32 %v159_v9, %v158_v19  ;;  %v193_v32 = vsel %vm110_vm1, %v85_v12, 0.0  ;;  %v180_v37 = vsel %vm122_vm2, %v81_v17, 0.0  ;;  %v195_v41 = vsel %vm110_vm1, %v86_v22, 0.0  ;;  %v96_v62 = vld [vmem:[#allocation2 + $0x150] sm:$0xff]  ;;  %v97_v63 = vld [vmem:[#allocation2 + $0x158] sm:$0xff]  ;;  %v98_v3 = vld [vmem:[#allocation2 + $0x160] sm:$0xff]  ;;  %p502_p0 = pnand %p501_p13, %p495_p10 }
  0x49   :  { %v126_v29 = vadd.f32 %v125_v18, %v124_v7  ;;  %v144_v35 = vrot.slane %v143_v24, 4  ;;  %v177_v36 = vadd.f32 %v176_v20, %v175_v25  ;;  %v192_v38 = vadd.f32 %v191_v27, %v190_v26  ;;  %v95_v7 = vld [vmem:[#allocation2 + $0x148] sm:$0x1]  ;;  %v100_v22 = vld [vmem:[#allocation2 + $0x170] sm:$0xff]  ;;  %v105_v27 = vld [vmem:[#allocation2 + $0x198] sm:$0xff] }
  0x4a   :  { %v162_v40 = vadd.f32 %v161_v14, %v160_v30  ;;  %v197_v42 = vsel %vm110_vm1, %v87_v23, 0.0  ;;  %v207_v48 = vsel %vm110_vm1, %v89_v28, 0.0  ;;  %v208_v51 = vsel %vm110_vm1, %v90_v33, 0.0  ;;  %v99_v12 = vld [vmem:[#allocation2 + $0x168] sm:$0xff]  ;;  %v104_v23 = vld [vmem:[#allocation2 + $0x190] sm:$0xff]  ;;  %v106_v33 = vld [vmem:[#allocation2 + $0x1a0] sm:$0xff] }
  0x4b   :  { %v127_v39 = vrot.slane %v126_v29, 2  ;;  %v145_v45 = vadd.f32 %v144_v35, %v143_v24  ;;  %v179_v46 = vadd.f32 %v178_v31, %v177_v36  ;;  %v194_v47 = vadd.f32 %v193_v32, %v192_v38  ;;  %v103_v17 = vld [vmem:[#allocation2 + $0x188] sm:$0xff]  ;;  %v101_v32 = vld [vmem:[#allocation2 + $0x178] sm:$0xff] }
  0x4c   :  { %v163_v50 = vrot.slane %v162_v40, 4  ;;  %v210_v52 = vsel %vm110_vm1, %v91_v34, 0.0  ;;  %v209_v57 = vadd.f32 %v208_v51, %v207_v48  ;;  %v199_v59 = vsel %vm122_vm2, %v88_v43, 0.0  ;;  %v107_v43 = vld [vmem:[#allocation2 + $0x1a8] sm:$0xff] }
  0x4d   :  { %v128_v49 = vadd.f32 %v127_v39, %v126_v29  ;;  %v146_v54 = vrot.slane %v145_v45, 2  ;;  %v181_v55 = vadd.f32 %v180_v37, %v179_v46  ;;  %v196_v56 = vadd.f32 %v195_v41, %v194_v47 }
  0x4e   :  { %v164_v58 = vadd.f32 %v163_v50, %v162_v40  ;;  %v212_v60 = vsel %vm110_vm1, %v92_v44, 0.0  ;;  %v211_v2 = vadd.f32 %v210_v52, %v209_v57  ;;  %v214_v6 = vsel %vm110_vm1, %v93_v53, 0.0  ;;  %v108_v52 = vld [vmem:[#allocation2 + $0x1b0] sm:$0xff] }
  0x4f   :  { %v182_v0 = vrot.slane %v181_v55, 4  ;;  %v198_v1 = vadd.f32 %v197_v42, %v196_v56  ;;  %v147_v4 = vadd.f32 %v146_v54, %v145_v45  ;;  %v129_v8 = vrot.slane %v128_v49, 1  ;;  %v102_v42 = vld [vmem:[#allocation2 + $0x180] sm:$0x1] }
  0x50   :  { %v165_v5 = vrot.slane %v164_v58, 2  ;;  %v213_v11 = vadd.f32 %v212_v60, %v211_v2  ;;  %v216_v14 = vsel %vm110_vm1, %v94_v61, 0.0  ;;  %v226_v15 = vsel %vm110_vm1, %v96_v62, 0.0  ;;  %v109_v60 = vld [vmem:[#allocation2 + $0x1b8] sm:$0x1] }
  0x51   :  { %v183_v9 = vadd.f32 %v182_v0, %v181_v55  ;;  %v200_v10 = vadd.f32 %v199_v59, %v198_v1  ;;  %v227_v16 = vsel %vm110_vm1, %v97_v63, 0.0  ;;  %v229_v21 = vsel %vm110_vm1, %v98_v3, 0.0 }
  0x52   :  { %v166_v13 = vadd.f32 %v165_v5, %v164_v58  ;;  %v215_v20 = vadd.f32 %v214_v6, %v213_v11  ;;  %v148_v24 = vrot.slane %v147_v4, 1  ;;  %v218_v25 = vsel %vm122_vm2, %v95_v7, 0.0 }
  0x53   :  { %v184_v18 = vrot.slane %v183_v9, 2  ;;  %v201_v19 = vrot.slane %v200_v10, 4  ;;  %v228_v26 = vadd.f32 %v227_v16, %v226_v15  ;;  %v130_v28 = vadd.f32 %v129_v8, %v128_v49 }
  0x54   :  { %v217_v30 = vadd.f32 %v216_v14, %v215_v20  ;;  %v231_v31 = vsel %vm110_vm1, %v99_v12, 0.0  ;;  %v167_v34 = vrot.slane %v166_v13, 1  ;;  %v245_v37 = vsel %vm110_vm1, %v103_v17, 0.0 }
  0x55   :  { %v202_v29 = vadd.f32 %v201_v19, %v200_v10  ;;  %v185_v35 = vadd.f32 %v184_v18, %v183_v9  ;;  %v230_v36 = vadd.f32 %v229_v21, %v228_v26  ;;  %v233_v40 = vsel %vm110_vm1, %v100_v22, 0.0 }
  0x56   :  { %v219_v39 = vadd.f32 %v218_v25, %v217_v30  ;;  %v246_v41 = vsel %vm110_vm1, %v104_v23, 0.0  ;;  %v149_v44 = vadd.f32 %v148_v24, %v147_v4  ;;  %v248_v47 = vsel %vm110_vm1, %v105_v27, 0.0 }
  0x57   :  { %v203_v38 = vrot.slane %v202_v29, 2  ;;  %v232_v45 = vadd.f32 %v231_v31, %v230_v36  ;;  %v247_v46 = vadd.f32 %v246_v41, %v245_v37  ;;  %v235_v50 = vsel %vm110_vm1, %v101_v32, 0.0 }
  0x58   :  { %v220_v49 = vrot.slane %v219_v39, 4  ;;  %v250_v51 = vsel %vm110_vm1, %v106_v33, 0.0  ;;  %v186_v53 = vrot.slane %v185_v35, 1  ;;  %v168_v56 = vadd.f32 %v167_v34, %v166_v13 }
  0x59   :  { %v204_v48 = vadd.f32 %v203_v38, %v202_v29  ;;  %v234_v54 = vadd.f32 %v233_v40, %v232_v45  ;;  %v249_v55 = vadd.f32 %v248_v47, %v247_v46  ;;  %v237_v58 = vsel %vm122_vm2, %v102_v42, 0.0 }
  0x5a   :  { %v221_v57 = vadd.f32 %v220_v49, %v219_v39  ;;  %v252_v59 = vsel %vm110_vm1, %v107_v43, 0.0  ;;  %v265_v63 = vmul.f32 0.020408163, %v130_v28  ;;  %v266_v0 = vmul.f32 0.020408163, %v149_v44 }
  0x5b   :  { %v236_v61 = vadd.f32 %v235_v50, %v234_v54  ;;  %v251_v62 = vadd.f32 %v250_v51, %v249_v55  ;;  %v205_v1 = vrot.slane %v204_v48, 1  ;;  %v254_v3 = vsel %vm110_vm1, %v108_v52, 0.0  ;;  %v395_v39 = vld [vmem:[#allocation7] ss:$0 sm:$0xff] }
  0x5c   :  { %v222_v2 = vrot.slane %v221_v57, 2  ;;  %v187_v4 = vadd.f32 %v186_v53, %v185_v35  ;;  %v256_v8 = vsel %vm122_vm2, %v109_v60, 0.0  ;;  %v267_v9 = vmul.f32 0.020408163, %v168_v56 }
  0x5d   :  { %v238_v5 = vadd.f32 %v237_v58, %v236_v61  ;;  %v253_v6 = vadd.f32 %v252_v59, %v251_v62  ;;  %v293_v12 = vsel %vm292_vm3, %v266_v0, %v265_v63  ;;  %v206_v13 = vadd.f32 %v205_v1, %v204_v48 }
  0x5e   :  { %v223_v7 = vadd.f32 %v222_v2, %v221_v57  ;;  %v268_v17 = vmul.f32 0.020408163, %v187_v4  ;;  %v295_v18 = vsel %vm294_vm4, %v267_v9, %v293_v12  ;;  %vm304_vm9 = vcmask 1047559  }
  0x5f   :  { %v239_v10 = vrot.slane %v238_v5, 4  ;;  %v255_v11 = vadd.f32 %v254_v3, %v253_v6  ;;  %v269_v22 = vmul.f32 0.020408163, %v206_v13 }
  0x60   :  { %v224_v14 = vrot.slane %v223_v7, 1  ;;  %v297_v25 = vsel %vm296_vm5, %v268_v17, %v295_v18 }
  0x61   :  { %v240_v15 = vadd.f32 %v239_v10, %v238_v5  ;;  %v257_v16 = vadd.f32 %v256_v8, %v255_v11  ;;  %v299_v29 = vsel %vm298_vm6, %v269_v22, %v297_v25 }
  0x62   :  { %v225_v19 = vadd.f32 %v224_v14, %v223_v7 }
  0x63   :  { %v241_v20 = vrot.slane %v240_v15, 2  ;;  %v258_v21 = vrot.slane %v257_v16, 4 }
  0x64   :  { %v270_v28 = vmul.f32 0.020408163, %v225_v19 }
  0x65   :  { %v242_v23 = vadd.f32 %v241_v20, %v240_v15  ;;  %v259_v24 = vadd.f32 %v258_v21, %v257_v16 }
  0x66   :  { %v301_v34 = vsel %vm300_vm7, %v270_v28, %v299_v29 }
  0x67   :  { %v243_v26 = vrot.slane %v242_v23, 1  ;;  %v260_v27 = vrot.slane %v259_v24, 2 }
  0x69   :  { %v244_v30 = vadd.f32 %v243_v26, %v242_v23  ;;  %v261_v31 = vadd.f32 %v260_v27, %v259_v24 }
  0x6b   :  { %v262_v32 = vrot.slane %v261_v31, 1  ;;  %v271_v33 = vmul.f32 0.020408163, %v244_v30 }
  0x6d   :  { %v263_v35 = vadd.f32 %v262_v32, %v261_v31  ;;  %v303_v36 = vsel %vm302_vm8, %v271_v33, %v301_v34 }
  0x6f   :  { %v272_v37 = vmul.f32 0.020408163, %v263_v35 }
  0x71   :  { %v305_v38 = vsel %vm304_vm9, %v272_v37, %v303_v36 }
  0x72   :  { %411 = vmatmul.mubr.msk.f32.vlgmr.msra.gmra.mrb[0].mxu0 %vm110_vm1, %v305_v38 }
 0x145   :  { %v374_v40 = vpop.f32.mrb[0].mxu0 }
 0x146   :  { %v375_v41 = vadd.f32 %v395_v39, %v374_v40  ;;  %v412_v42 = vpop.f32.mrb[1].mxu0 }
 0x148   :  { %378 = vst [vmem:[#allocation8] sm:$0xff] %v375_v41 }
 0x149   :  { %505 = shalt.err (!%p502_p0)
}
 0x14a   :  { %s506_s26 = scalar_lea.hbm %s666_s3, 128 }
 0x14b   :  { %p507_p1 = scmp.ne.s32.totalorder %s666_s3, %s506_s26  ;;  %p510_p2 = scmp.lt.u32.totalorder %s506_s26, %s666_s3 }
 0x14d   :  { %p512_p3 = pnand %p510_p2, %p507_p1 }
 0x14f   :  { %515 = shalt.err (!%p512_p3)
}
 0x150   :  { %388 = dma.vmem_to_hbm [thread:$0]  %s386_s22, 128, %s666_s3, [#allocation4]  }
 0x151   :  { %520 = dma.done.wait [#allocation4], 128  }
 0x152   :  { %521 = vsyncadd [#allocation4], 4294967168 }
 0x153   :  { %392 = vsyncpa [#allocation3], 1 }
 0x154   :  { %393 = vsyncpa [#allocation6], 1 }
 0x155   :  { %394 = vsyncpa [#allocation4], 1 }

</bundles_post_ra>
